<compile_context>
chip_gen: v7x
topology: tpu7x:2x2x1
jax: 0.10.0
libtpu: 0.0.40
codegen_flags: <defaults>
</compile_context>

<pallas_src>
import numpy as np
import jax
import jax.numpy as jnp
from jax.experimental import pallas as pl
from jax.experimental.pallas import tpu as pltpu


# ---------------------------------------------------------------------------
# Fused QSM forward kernel: one grid step == TB (b, c) volumes.
# ---------------------------------------------------------------------------
def _qsm_forward_kernel(x_ref,      # [TB, D, HW]  real input volumes
                        khw_ref,    # [HW, 2HW]    [Re(F_H⊗F_W) | Im(F_H⊗F_W)]
                        gr_ref,     # [D, D]       Re(F_D)        forward DFT along D
                        gi_ref,     # [D, D]       Im(F_D)
                        hr_ref,     # [D, D]       Re(conj(F_D))  inverse DFT along D (unnormalised)
                        hi_ref,     # [D, D]       Im(conj(F_D))
                        dip2_ref,   # [D, 2HW]     [dip | dip] * 1/(D*H*W)
                        o_ref):     # [TB, D, HW]  real output volumes
    f32 = jnp.float32
    tb, d, hw = x_ref.shape

    # ---- fft over (H, W): real input, ONE big matmul, real|imag in lane halves ----
    v = x_ref[...].reshape(tb * d, hw)
    a = jnp.dot(v, khw_ref[...], preferred_element_type=f32).reshape(tb, d, 2 * hw)

    # ---- fft over D: batched left-multiply on the lane-halves representation ----
    gr = jnp.broadcast_to(gr_ref[...], (tb, d, d))
    gi = jnp.broadcast_to(gi_ref[...], (tb, d, d))
    p = jnp.einsum('tij,tjk->tik', gr, a, preferred_element_type=f32)
    q = jnp.einsum('tij,tjk->tik', gi, a, preferred_element_type=f32)
    b_r = p[..., :hw] - q[..., hw:]          # Re(fft_d(fft_hw(x)))
    b_i = q[..., :hw] + p[..., hw:]          # Im(fft_d(fft_hw(x)))

    # ---- k-space dipole multiply (real dipole, 1/(D*H*W) pre-folded) ----
    pb = jnp.concatenate([b_r, b_i], axis=-1) * dip2_ref[...]

    # ---- ifft over D: batched left-multiply by conj(F_D) ----
    hr = jnp.broadcast_to(hr_ref[...], (tb, d, d))
    hi = jnp.broadcast_to(hi_ref[...], (tb, d, d))
    r = jnp.einsum('tij,tjk->tik', hr, pb, preferred_element_type=f32)
    s = jnp.einsum('tij,tjk->tik', hi, pb, preferred_element_type=f32)
    c_r = (r[..., :hw] - s[..., hw:]).reshape(tb * d, hw)
    c_i = (s[..., :hw] + r[..., hw:]).reshape(tb * d, hw)

    # ---- ifft over (H, W), real part only; conj-symmetry reuses the forward planes ----
    out = (jnp.dot(c_r, khw_ref[:, :hw], preferred_element_type=f32)
           + jnp.dot(c_i, khw_ref[:, hw:], preferred_element_type=f32))
    o_ref[...] = out.reshape(tb, d, hw).astype(o_ref.dtype)


# ---------------------------------------------------------------------------
# DFT operand construction (host-side, exact complex128, stored as f32 planes).
# ---------------------------------------------------------------------------
def _dft_matrix(n):
    k = np.arange(n)
    return np.exp(-2.0j * np.pi * np.outer(k, k) / n)     # forward DFT matrix


def _make_dft_operands(d, h, w):
    k_hw = np.kron(_dft_matrix(h), _dft_matrix(w))             # forward 2-D DFT over (H, W)
    khw_cat = np.concatenate([k_hw.real, k_hw.imag], axis=1)   # [HW, 2HW]
    g = _dft_matrix(d)                                         # forward DFT along D
    h_inv = np.conj(g)                                         # inverse along D (1/D in dipole)
    return (jnp.asarray(khw_cat, jnp.float32),
            jnp.asarray(g.real, jnp.float32), jnp.asarray(g.imag, jnp.float32),
            jnp.asarray(h_inv.real, jnp.float32), jnp.asarray(h_inv.imag, jnp.float32))


def _choose_tb(bc, d, target_rows=256):
    """Largest divisor of bc with tb*d <~ target_rows MXU rows; keep >=2 grid steps
    (megacore) whenever half the batch already fills >=128 rows."""
    target = max(1, target_rows // max(d, 1))
    if bc >= 2 and (bc // 2) * d >= 128:
        target = min(target, bc // 2)
    tb = 1
    for t in range(1, min(bc, target) + 1):
        if bc % t == 0:
            tb = t
    return tb


# ---------------------------------------------------------------------------
# forward_model equivalent
# ---------------------------------------------------------------------------
def forward_model(x, dipole_kernel):
    """out = real( ifft3( fft3(x) * dipole_kernel ) ), x: [B, C, D, H, W] real."""
    b, c, d, h, w = x.shape
    hw = h * w
    bc = b * c
    tb = _choose_tb(bc, d)

    x2 = x.astype(jnp.float32).reshape(bc, d, hw)              # contiguous reshape, no transpose
    dip = dipole_kernel.astype(jnp.float32).reshape(d, hw) * (1.0 / (d * h * w))
    dip2 = jnp.concatenate([dip, dip], axis=-1)                # [D, 2HW], applied to both halves

    khw_cat, gr, gi, hr, hi = _make_dft_operands(d, h, w)

    vol_spec = pl.BlockSpec((tb, d, hw), lambda i: (i, 0, 0))
    khw_spec = pl.BlockSpec((hw, 2 * hw), lambda i: (0, 0))    # invariant, reused every step
    dmat_spec = pl.BlockSpec((d, d), lambda i: (0, 0))
    dip_spec = pl.BlockSpec((d, 2 * hw), lambda i: (0, 0))

    flops = int(bc * (8 * d * hw * hw + 16 * d * d * hw))
    bytes_accessed = int(4 * (2 * bc * d * hw + 2 * hw * hw + 4 * d * d + 2 * d * hw))

    out = pl.pallas_call(
        _qsm_forward_kernel,
        out_shape=jax.ShapeDtypeStruct((bc, d, hw), jnp.float32),
        grid_spec=pltpu.PrefetchScalarGridSpec(
            num_scalar_prefetch=0,
            grid=(bc // tb,),
            in_specs=[vol_spec, khw_spec,
                      dmat_spec, dmat_spec, dmat_spec, dmat_spec,
                      dip_spec],
            out_specs=vol_spec,
        ),
        compiler_params=pltpu.CompilerParams(
            dimension_semantics=("parallel",),      # shard volume blocks across TensorCores
            vmem_limit_bytes=32 * 1024 * 1024,
        ),
        cost_estimate=pl.CostEstimate(flops=flops, transcendentals=0,
                                      bytes_accessed=bytes_accessed),
    )(x2, khw_cat, gr, gi, hr, hi, dip2)

    return out.reshape(b, c, d, h, w)


def make_dipole_kernel(d, h, w):
    kz = np.fft.fftfreq(d)[:, None, None]
    ky = np.fft.fftfreq(h)[None, :, None]
    kx = np.fft.fftfreq(w)[None, None, :]
    k2 = kz ** 2 + ky ** 2 + kx ** 2
    with np.errstate(divide="ignore", invalid="ignore"):
        dk = 1.0 / 3.0 - (kz ** 2) / k2
    dk[0, 0, 0] = 0.0
    return jnp.asarray(dk, jnp.float32)


if __name__ == "__main__":
    B, C, D, H, W = 2, 1, 8, 16, 16
    key = jax.random.PRNGKey(0)
    x = jax.random.normal(key, (B, C, D, H, W), dtype=jnp.float32)
    dipole = make_dipole_kernel(D, H, W)

    out = jax.block_until_ready(forward_model(x, dipole))

    # Reference semantics (same as torch.real(ifft3(fft3(x) * dipole)))
    xk = jnp.fft.fftn(x.astype(jnp.complex64), axes=(-3, -2, -1))
    ref = jnp.real(jnp.fft.ifftn(xk * dipole, axes=(-3, -2, -1)))
    err = float(jnp.max(jnp.abs(out - ref)))

    assert out.shape == x.shape and out.dtype == jnp.float32
    assert err < 1e-3, f"max abs error {err}"
    print("KERNEL_OK")
</pallas_src>

<mosaic_0001>
module attributes {stable_mosaic.version = 11 : i64} {
  func.func @_qsm_forward_kernel(%arg0: i32, %arg1: memref<2x8x256xf32, #tpu.memory_space<vmem>>, %arg2: memref<256x512xf32, #tpu.memory_space<vmem>>, %arg3: memref<8x8xf32, #tpu.memory_space<vmem>>, %arg4: memref<8x8xf32, #tpu.memory_space<vmem>>, %arg5: memref<8x8xf32, #tpu.memory_space<vmem>>, %arg6: memref<8x8xf32, #tpu.memory_space<vmem>>, %arg7: memref<8x512xf32, #tpu.memory_space<vmem>>, %arg8: memref<2x8x256xf32, #tpu.memory_space<vmem>>) attributes {dimension_semantics = [#tpu.dimension_semantics<parallel>], iteration_bounds = array<i64: 1>, scalar_prefetch = 0 : i64, scratch_operands = 0 : i64, tpu.core_type = #tpu.core_type<tc>, window_params = [{transform_indices = @transform_0, window_bounds = array<i64: 2, 8, 256>}, {pipeline_mode = #tpu.pipeline_mode<synchronous>, transform_indices = @transform_1, window_bounds = array<i64: 256, 512>}, {pipeline_mode = #tpu.pipeline_mode<synchronous>, transform_indices = @transform_2, window_bounds = array<i64: 8, 8>}, {pipeline_mode = #tpu.pipeline_mode<synchronous>, transform_indices = @transform_3, window_bounds = array<i64: 8, 8>}, {pipeline_mode = #tpu.pipeline_mode<synchronous>, transform_indices = @transform_4, window_bounds = array<i64: 8, 8>}, {pipeline_mode = #tpu.pipeline_mode<synchronous>, transform_indices = @transform_5, window_bounds = array<i64: 8, 8>}, {pipeline_mode = #tpu.pipeline_mode<synchronous>, transform_indices = @transform_6, window_bounds = array<i64: 8, 512>}, {transform_indices = @transform_7, window_bounds = array<i64: 2, 8, 256>}]} {
    %c0 = arith.constant 0 : index
    %c0_0 = arith.constant 0 : index
    %c0_1 = arith.constant 0 : index
    %0 = vector.load %arg1[%c0, %c0_0, %c0_1] : memref<2x8x256xf32, #tpu.memory_space<vmem>>, vector<2x8x256xf32>
    %1 = vector.shape_cast %0 : vector<2x8x256xf32> to vector<16x256xf32>
    %c0_2 = arith.constant 0 : index
    %c0_3 = arith.constant 0 : index
    %2 = vector.load %arg2[%c0_2, %c0_3] : memref<256x512xf32, #tpu.memory_space<vmem>>, vector<256x512xf32>
    %cst = arith.constant dense<0.000000e+00> : vector<16x512xf32>
    %3 = tpu.matmul %1, %2, %cst {dimension_numbers = #tpu.dot_dimension_numbers<[1], [0], [0], [1], [0, 0, 1, 1], [], []>} : vector<16x256xf32>, vector<256x512xf32>, vector<16x512xf32> -> vector<16x512xf32>
    %4 = vector.shape_cast %3 : vector<16x512xf32> to vector<2x8x512xf32>
    %c0_4 = arith.constant 0 : index
    %c0_5 = arith.constant 0 : index
    %5 = vector.load %arg3[%c0_4, %c0_5] : memref<8x8xf32, #tpu.memory_space<vmem>>, vector<8x8xf32>
    %6 = vector.shape_cast %5 : vector<8x8xf32> to vector<1x8x8xf32>
    %7 = vector.broadcast %6 : vector<1x8x8xf32> to vector<2x8x8xf32>
    %c0_6 = arith.constant 0 : index
    %c0_7 = arith.constant 0 : index
    %8 = vector.load %arg4[%c0_6, %c0_7] : memref<8x8xf32, #tpu.memory_space<vmem>>, vector<8x8xf32>
    %9 = vector.shape_cast %8 : vector<8x8xf32> to vector<1x8x8xf32>
    %10 = vector.broadcast %9 : vector<1x8x8xf32> to vector<2x8x8xf32>
    "tpu.trace_start"() <{level = 10 : i32, message = "tij,tjk->tik"}> : () -> ()
    %cst_8 = arith.constant dense<0.000000e+00> : vector<2x8x512xf32>
    %11 = tpu.matmul %7, %4, %cst_8 {dimension_numbers = #tpu.dot_dimension_numbers<[2], [1], [1], [2], [0, 0, 0, 1, 1, 2], [0], [0]>} : vector<2x8x8xf32>, vector<2x8x512xf32>, vector<2x8x512xf32> -> vector<2x8x512xf32>
    %cst_9 = arith.constant dense<0.000000e+00> : vector<2x8x512xf32>
    %12 = tpu.matmul %10, %4, %cst_9 {dimension_numbers = #tpu.dot_dimension_numbers<[2], [1], [1], [2], [0, 0, 0, 1, 1, 2], [0], [0]>} : vector<2x8x8xf32>, vector<2x8x512xf32>, vector<2x8x512xf32> -> vector<2x8x512xf32>
    "tpu.trace_stop"() : () -> ()
    %13 = vector.extract_strided_slice %11 {offsets = [0, 0, 0], sizes = [2, 8, 256], strides = [1, 1, 1]} : vector<2x8x512xf32> to vector<2x8x256xf32>
    %14 = vector.extract_strided_slice %12 {offsets = [0, 0, 256], sizes = [2, 8, 256], strides = [1, 1, 1]} : vector<2x8x512xf32> to vector<2x8x256xf32>
    %15 = arith.subf %13, %14 : vector<2x8x256xf32>
    %16 = vector.extract_strided_slice %12 {offsets = [0, 0, 0], sizes = [2, 8, 256], strides = [1, 1, 1]} : vector<2x8x512xf32> to vector<2x8x256xf32>
    %17 = vector.extract_strided_slice %11 {offsets = [0, 0, 256], sizes = [2, 8, 256], strides = [1, 1, 1]} : vector<2x8x512xf32> to vector<2x8x256xf32>
    %18 = arith.addf %16, %17 : vector<2x8x256xf32>
    %19 = tpu.concatenate %15, %18 in 2 : vector<2x8x256xf32>, vector<2x8x256xf32> -> vector<2x8x512xf32>
    %c0_10 = arith.constant 0 : index
    %c0_11 = arith.constant 0 : index
    %20 = vector.load %arg7[%c0_10, %c0_11] : memref<8x512xf32, #tpu.memory_space<vmem>>, vector<8x512xf32>
    %21 = vector.shape_cast %20 : vector<8x512xf32> to vector<1x8x512xf32>
    %22 = vector.broadcast %21 : vector<1x8x512xf32> to vector<2x8x512xf32>
    %23 = arith.mulf %19, %22 : vector<2x8x512xf32>
    %c0_12 = arith.constant 0 : index
    %c0_13 = arith.constant 0 : index
    %24 = vector.load %arg5[%c0_12, %c0_13] : memref<8x8xf32, #tpu.memory_space<vmem>>, vector<8x8xf32>
    %25 = vector.shape_cast %24 : vector<8x8xf32> to vector<1x8x8xf32>
    %26 = vector.broadcast %25 : vector<1x8x8xf32> to vector<2x8x8xf32>
    %c0_14 = arith.constant 0 : index
    %c0_15 = arith.constant 0 : index
    %27 = vector.load %arg6[%c0_14, %c0_15] : memref<8x8xf32, #tpu.memory_space<vmem>>, vector<8x8xf32>
    %28 = vector.shape_cast %27 : vector<8x8xf32> to vector<1x8x8xf32>
    %29 = vector.broadcast %28 : vector<1x8x8xf32> to vector<2x8x8xf32>
    "tpu.trace_start"() <{level = 10 : i32, message = "tij,tjk->tik"}> : () -> ()
    %cst_16 = arith.constant dense<0.000000e+00> : vector<2x8x512xf32>
    %30 = tpu.matmul %26, %23, %cst_16 {dimension_numbers = #tpu.dot_dimension_numbers<[2], [1], [1], [2], [0, 0, 0, 1, 1, 2], [0], [0]>} : vector<2x8x8xf32>, vector<2x8x512xf32>, vector<2x8x512xf32> -> vector<2x8x512xf32>
    %cst_17 = arith.constant dense<0.000000e+00> : vector<2x8x512xf32>
    %31 = tpu.matmul %29, %23, %cst_17 {dimension_numbers = #tpu.dot_dimension_numbers<[2], [1], [1], [2], [0, 0, 0, 1, 1, 2], [0], [0]>} : vector<2x8x8xf32>, vector<2x8x512xf32>, vector<2x8x512xf32> -> vector<2x8x512xf32>
    "tpu.trace_stop"() : () -> ()
    %32 = vector.extract_strided_slice %30 {offsets = [0, 0, 0], sizes = [2, 8, 256], strides = [1, 1, 1]} : vector<2x8x512xf32> to vector<2x8x256xf32>
    %33 = vector.extract_strided_slice %31 {offsets = [0, 0, 256], sizes = [2, 8, 256], strides = [1, 1, 1]} : vector<2x8x512xf32> to vector<2x8x256xf32>
    %34 = arith.subf %32, %33 : vector<2x8x256xf32>
    %35 = vector.shape_cast %34 : vector<2x8x256xf32> to vector<16x256xf32>
    %36 = vector.extract_strided_slice %31 {offsets = [0, 0, 0], sizes = [2, 8, 256], strides = [1, 1, 1]} : vector<2x8x512xf32> to vector<2x8x256xf32>
    %37 = vector.extract_strided_slice %30 {offsets = [0, 0, 256], sizes = [2, 8, 256], strides = [1, 1, 1]} : vector<2x8x512xf32> to vector<2x8x256xf32>
    %38 = arith.addf %36, %37 : vector<2x8x256xf32>
    %39 = vector.shape_cast %38 : vector<2x8x256xf32> to vector<16x256xf32>
    %c0_18 = arith.constant 0 : index
    %c0_19 = arith.constant 0 : index
    %40 = vector.load %arg2[%c0_18, %c0_19] : memref<256x512xf32, #tpu.memory_space<vmem>>, vector<256x256xf32>
    %cst_20 = arith.constant dense<0.000000e+00> : vector<16x256xf32>
    %41 = tpu.matmul %35, %40, %cst_20 {dimension_numbers = #tpu.dot_dimension_numbers<[1], [0], [0], [1], [0, 0, 1, 1], [], []>} : vector<16x256xf32>, vector<256x256xf32>, vector<16x256xf32> -> vector<16x256xf32>
    %c0_21 = arith.constant 0 : index
    %c256 = arith.constant 256 : index
    %42 = vector.load %arg2[%c0_21, %c256] : memref<256x512xf32, #tpu.memory_space<vmem>>, vector<256x256xf32>
    %cst_22 = arith.constant dense<0.000000e+00> : vector<16x256xf32>
    %43 = tpu.matmul %39, %42, %cst_22 {dimension_numbers = #tpu.dot_dimension_numbers<[1], [0], [0], [1], [0, 0, 1, 1], [], []>} : vector<16x256xf32>, vector<256x256xf32>, vector<16x256xf32> -> vector<16x256xf32>
    %44 = arith.addf %41, %43 : vector<16x256xf32>
    %45 = vector.shape_cast %44 : vector<16x256xf32> to vector<2x8x256xf32>
    %c0_23 = arith.constant 0 : index
    %c0_24 = arith.constant 0 : index
    %c0_25 = arith.constant 0 : index
    %46 = vector.load %arg8[%c0_23, %c0_24, %c0_25] : memref<2x8x256xf32, #tpu.memory_space<vmem>>, vector<2x8x256xf32>
    tpu.vector_store %arg8[%c0_23, %c0_24, %c0_25], %45 {strides = array<i32>} : memref<2x8x256xf32, #tpu.memory_space<vmem>>, vector<2x8x256xf32>,
    return
  }
  func.func @transform_0(%arg0: i32) -> (i32, i32, i32) {
    %c0_i32 = arith.constant 0 : i32
    %c0_i32_0 = arith.constant 0 : i32
    %c0_i32_1 = arith.constant 0 : i32
    return %arg0, %c0_i32, %c0_i32_0 : i32, i32, i32
  }
  func.func @transform_1(%arg0: i32) -> (i32, i32) {
    %c0_i32 = arith.constant 0 : i32
    %c0_i32_0 = arith.constant 0 : i32
    %c0_i32_1 = arith.constant 0 : i32
    return %c0_i32, %c0_i32_0 : i32, i32
  }
  func.func @transform_2(%arg0: i32) -> (i32, i32) {
    %c0_i32 = arith.constant 0 : i32
    %c0_i32_0 = arith.constant 0 : i32
    %c0_i32_1 = arith.constant 0 : i32
    return %c0_i32, %c0_i32_0 : i32, i32
  }
  func.func @transform_3(%arg0: i32) -> (i32, i32) {
    %c0_i32 = arith.constant 0 : i32
    %c0_i32_0 = arith.constant 0 : i32
    %c0_i32_1 = arith.constant 0 : i32
    return %c0_i32, %c0_i32_0 : i32, i32
  }
  func.func @transform_4(%arg0: i32) -> (i32, i32) {
    %c0_i32 = arith.constant 0 : i32
    %c0_i32_0 = arith.constant 0 : i32
    %c0_i32_1 = arith.constant 0 : i32
    return %c0_i32, %c0_i32_0 : i32, i32
  }
  func.func @transform_5(%arg0: i32) -> (i32, i32) {
    %c0_i32 = arith.constant 0 : i32
    %c0_i32_0 = arith.constant 0 : i32
    %c0_i32_1 = arith.constant 0 : i32
    return %c0_i32, %c0_i32_0 : i32, i32
  }
  func.func @transform_6(%arg0: i32) -> (i32, i32) {
    %c0_i32 = arith.constant 0 : i32
    %c0_i32_0 = arith.constant 0 : i32
    %c0_i32_1 = arith.constant 0 : i32
    return %c0_i32, %c0_i32_0 : i32, i32
  }
  func.func @transform_7(%arg0: i32) -> (i32, i32, i32) {
    %c0_i32 = arith.constant 0 : i32
    %c0_i32_0 = arith.constant 0 : i32
    %c0_i32_1 = arith.constant 0 : i32
    return %arg0, %c0_i32, %c0_i32_0 : i32, i32, i32
  }
}

</mosaic_0001>

<bundles_post_ra>
// kernel: tpu_custom_call.1
= control target key start
LH: loop header
LB: loop body
LE: loop exit
PB: predicated region body
PF: predicated region fallthrough
CT: control target
= control target key end

     0   :  { %12 = vsyncpa [#allocation3], 0  ;;  %s2725_s0 = inlined_call_operand.hbm [shape: f32[2,8,256], index: 0, kind: input, shape index: {}]   ;;  %s2726_s1 = inlined_call_operand.hbm [shape: f32[256,512], index: 1, kind: input, shape index: {}]   ;;  %s2727_s2 = inlined_call_operand.hbm [shape: f32[8,8], index: 2, kind: input, shape index: {}]   ;;  %s2728_s3 = inlined_call_operand.vmem [shape: f32[8,8], index: 3, kind: input, shape index: {}]   ;;  %s2729_s4 = inlined_call_operand.hbm [shape: f32[8,8], index: 4, kind: input, shape index: {}]   ;;  %s2730_s5 = inlined_call_operand.vmem [shape: f32[8,8], index: 5, kind: input, shape index: {}]   ;;  %s2731_s6 = inlined_call_operand.hbm [shape: f32[8,512], index: 6, kind: input, shape index: {}]   ;;  %s2732_s7 = inlined_call_operand.hbm [shape: f32[2,8,256], index: 7, kind: output, shape index: {}]  }
   0x1   :  { %13 = vsyncpa [#allocation6], 0 }
   0x2   :  { %14 = vsyncpa [#allocation9], 0 }
   0x3   :  { %15 = vsyncpa [#allocation4], 0  ;;  %s2296_s24 = smov [#allocation5]   ;;  %s2156_s28 = scalar_lea.hbm %s2726_s1, 16384 }
   0x4   :  { %s33_s25 = sshll.u32 %s2296_s24, 4  ;;  %p2157_p0 = scmp.ne.s32.totalorder %s2726_s1, %s2156_s28  ;;  %s34_s25 = int_to_ptr.vmem [resolvable:$true] %s33_s25 }
   0x5   :  { %p2160_p1 = scmp.lt.u32.totalorder %s2156_s28, %s2726_s1 }
   0x7   :  { %p2162_p2 = pnand %p2160_p1, %p2157_p0 }
   0x9   :  { %2165 = shalt.err (!%p2162_p2)
}
   0xa   :  { %s2166_s10 = scalar_lea.vmem %s34_s25, 16384  ;;  %p2171_p4 = scmp.lt.s32.totalorder %s34_s25, %s34_s25 }
   0xb   :  { %p2167_p3 = scmp.ne.s32.totalorder %s34_s25, %s2166_s10  ;;  %p2172_p5 = scmp.lt.s32.totalorder %s2166_s10, %s2166_s10 }
   0xd   :  { %p2173_p6 = por %p2172_p5, %p2171_p4 }
   0xf   :  { %p2174_p7 = pnand %p2173_p6, %p2167_p3 }
  0x11   :  { %2177 = shalt.err (!%p2174_p7)
}
  0x12   :  { %s2297_s11 = smov 512   ;;  %s2298_s12 = smov 32  }
  0x13   :  { %39 = dma.hbm_to_vmem [thread:$0]  %s2726_s1, 16384, %s34_s25, [#allocation6], %s2297_s11, %s2297_s11, %s2298_s12  }
  0x14   :  { %s2299_s15 = smov [#allocation8]   ;;  %s2300_s17 = smov [#allocation2]  }
  0x15   :  { %s58_s16 = sshll.u32 %s2299_s15, 4  ;;  %s21_s18 = sshll.u32 %s2300_s17, 4  ;;  %s59_s16 = int_to_ptr.vmem [resolvable:$true] %s58_s16  ;;  %s22_s18 = int_to_ptr.vmem [resolvable:$true] %s21_s18 }
  0x16   :  { %s2178_s21 = scalar_lea.hbm %s2729_s4, 128 }
  0x17   :  { %p2179_p8 = scmp.ne.s32.totalorder %s2729_s4, %s2178_s21  ;;  %p2182_p9 = scmp.lt.u32.totalorder %s2178_s21, %s2729_s4 }
  0x19   :  { %p2184_p10 = pnand %p2182_p9, %p2179_p8 }
  0x1b   :  { %2187 = shalt.err (!%p2184_p10)
}
  0x1c   :  { %s2188_s1 = scalar_lea.vmem %s59_s16, 128  ;;  %p2193_p12 = scmp.lt.s32.totalorder %s59_s16, %s59_s16 }
  0x1d   :  { %p2189_p11 = scmp.ne.s32.totalorder %s59_s16, %s2188_s1  ;;  %p2194_p13 = scmp.lt.s32.totalorder %s2188_s1, %s2188_s1 }
  0x1f   :  { %p2195_p0 = por %p2194_p13, %p2193_p12 }
  0x21   :  { %p2196_p1 = pnand %p2195_p0, %p2189_p11 }
  0x23   :  { %2199 = shalt.err (!%p2196_p1)
}
  0x24   :  { %61 = dma.hbm_to_vmem [thread:$0]  %s2729_s4, 128, %s59_s16, [#allocation9]  }
  0x25   :  { %s2200_s30 = scalar_lea.hbm %s2725_s0, 512 }
  0x26   :  { %p2201_p2 = scmp.ne.s32.totalorder %s2725_s0, %s2200_s30  ;;  %p2204_p3 = scmp.lt.u32.totalorder %s2200_s30, %s2725_s0 }
  0x28   :  { %p2206_p4 = pnand %p2204_p3, %p2201_p2 }
  0x2a   :  { %2209 = shalt.err (!%p2206_p4)
}
  0x2b   :  { %s2210_s12 = scalar_lea.vmem %s22_s18, 512  ;;  %p2215_p6 = scmp.lt.s32.totalorder %s22_s18, %s22_s18 }
  0x2c   :  { %p2211_p5 = scmp.ne.s32.totalorder %s22_s18, %s2210_s12  ;;  %p2216_p7 = scmp.lt.s32.totalorder %s2210_s12, %s2210_s12 }
  0x2e   :  { %p2217_p8 = por %p2216_p7, %p2215_p6 }
  0x30   :  { %p2218_p9 = pnand %p2217_p8, %p2211_p5 }
  0x32   :  { %2221 = shalt.err (!%p2218_p9)
}
  0x33   :  { %s2301_s4 = smov 256   ;;  %s2302_s13 = smov 16  }
  0x34   :  { %27 = dma.hbm_to_vmem [thread:$0]  %s2725_s0, 512, %s22_s18, [#allocation3], %s2301_s4, %s2301_s4, %s2302_s13  }
  0x35   :  { %s2303_s16 = smov [#allocation7]   ;;  %s2304_s19 = smov [#allocation10]  }
  0x36   :  { %s46_s17 = sshll.u32 %s2303_s16, 4  ;;  %s70_s20 = sshll.u32 %s2304_s19, 4  ;;  %s47_s17 = int_to_ptr.vmem [resolvable:$true] %s46_s17  ;;  %s71_s20 = int_to_ptr.vmem [resolvable:$true] %s70_s20 }
  0x37   :  { %s2222_s23 = scalar_lea.hbm %s2727_s2, 128 }
  0x38   :  { %p2223_p10 = scmp.ne.s32.totalorder %s2727_s2, %s2222_s23  ;;  %p2226_p11 = scmp.lt.u32.totalorder %s2222_s23, %s2727_s2 }
  0x3a   :  { %p2228_p12 = pnand %p2226_p11, %p2223_p10 }
  0x3c   :  { %2231 = shalt.err (!%p2228_p12)
}
  0x3d   :  { %s2232_s0 = scalar_lea.vmem %s47_s17, 128  ;;  %p2237_p0 = scmp.lt.s32.totalorder %s47_s17, %s47_s17 }
  0x3e   :  { %p2233_p13 = scmp.ne.s32.totalorder %s47_s17, %s2232_s0  ;;  %p2238_p1 = scmp.lt.s32.totalorder %s2232_s0, %s2232_s0 }
  0x40   :  { %p2239_p2 = por %p2238_p1, %p2237_p0 }
  0x42   :  { %p2240_p3 = pnand %p2239_p2, %p2233_p13 }
  0x44   :  { %2243 = shalt.err (!%p2240_p3)
}
  0x45   :  { %49 = dma.hbm_to_vmem [thread:$0]  %s2727_s2, 128, %s47_s17, [#allocation6]  }
  0x46   :  { %s2244_s30 = scalar_lea.hbm %s2731_s6, 512 }
  0x47   :  { %p2245_p4 = scmp.ne.s32.totalorder %s2731_s6, %s2244_s30  ;;  %p2248_p5 = scmp.lt.u32.totalorder %s2244_s30, %s2731_s6 }
  0x49   :  { %p2250_p6 = pnand %p2248_p5, %p2245_p4 }
  0x4b   :  { %2253 = shalt.err (!%p2250_p6)
}
  0x4c   :  { %s2254_s12 = scalar_lea.vmem %s71_s20, 512  ;;  %p2259_p8 = scmp.lt.s32.totalorder %s71_s20, %s71_s20 }
  0x4d   :  { %p2255_p7 = scmp.ne.s32.totalorder %s71_s20, %s2254_s12  ;;  %p2260_p9 = scmp.lt.s32.totalorder %s2254_s12, %s2254_s12 }
  0x4f   :  { %p2261_p10 = por %p2260_p9, %p2259_p8 }
  0x51   :  { %p2262_p11 = pnand %p2261_p10, %p2255_p7 }
  0x53   :  { %2265 = shalt.err (!%p2262_p11)
}
  0x54   :  { %73 = dma.hbm_to_vmem [thread:$0]  %s2731_s6, 512, %s71_s20, [#allocation9]  }
  0x55   :  { %2288 = dma.done.wait [#allocation3], 512  }
  0x56   :  { %2289 = vsyncadd [#allocation3], 4294966784 }
  0x57   :  { %2290 = dma.done.wait [#allocation6], 16512  }
  0x58   :  { %2291 = vsyncadd [#allocation6], 4294950784 }
  0x59   :  { %2292 = dma.done.wait [#allocation9], 640  }
  0x5a   :  { %2293 = vsyncadd [#allocation9], 4294966656  ;;  %v94_v0 = vld [vmem:[#allocation5 + $0x8] sm:$0xff]  ;;  %v93_v2 = vld [vmem:[#allocation5] sm:$0xff]  ;;  %vm377_vm0 = vcmask 64512  }
  0x5b   :  { %v98_v1 = vld [vmem:[#allocation5 + $0x28] sm:$0xff]  ;;  %v97_v4 = vld [vmem:[#allocation5 + $0x20] sm:$0xff] }
  0x5c   :  { %v2410_v3 = vpack.c.bf16 %v98_v1, %v94_v0  ;;  %v102_v5 = vld [vmem:[#allocation5 + $0x48] sm:$0xff]  ;;  %v2412_v7 = vpack.c.bf16 %v97_v4, %v93_v2  ;;  %v101_v9 = vld [vmem:[#allocation5 + $0x40] sm:$0xff] }
  0x5d   :  { %v106_v6 = vld [vmem:[#allocation5 + $0x68] sm:$0xff]  ;;  %v105_v10 = vld [vmem:[#allocation5 + $0x60] sm:$0xff] }
  0x5e   :  { %v2414_v8 = vpack.c.bf16 %v106_v6, %v102_v5  ;;  %v110_v11 = vld [vmem:[#allocation5 + $0x88] sm:$0xff]  ;;  %1878 = vmatprep.subr.bf16.mxu1 %v2410_v3  ;;  %v2418_v13 = vpack.c.bf16 %v105_v10, %v101_v9  ;;  %v109_v15 = vld [vmem:[#allocation5 + $0x80] sm:$0xff] }
  0x5f   :  { %v114_v12 = vld [vmem:[#allocation5 + $0xa8] sm:$0xff]  ;;  %1880 = vmatpush1.bf16.msra.mxu1 %v2412_v7  ;;  %v113_v16 = vld [vmem:[#allocation5 + $0xa0] sm:$0xff] }
  0x60   :  { %1882 = vmatprep.subr.bf16.mxu1 %v2414_v8  ;;  %v2421_v14 = vpack.c.bf16 %v114_v12, %v110_v11  ;;  %v118_v17 = vld [vmem:[#allocation5 + $0xc8] sm:$0xff]  ;;  %v2424_v19 = vpack.c.bf16 %v113_v16, %v109_v15  ;;  %v117_v21 = vld [vmem:[#allocation5 + $0xc0] sm:$0xff] }
  0x61   :  { %v122_v18 = vld [vmem:[#allocation5 + $0xe8] sm:$0xff]  ;;  %v121_v22 = vld [vmem:[#allocation5 + $0xe0] sm:$0xff] }
  0x62   :  { %v2427_v20 = vpack.c.bf16 %v122_v18, %v118_v17  ;;  %v126_v23 = vld [vmem:[#allocation5 + $0x108] sm:$0xff]  ;;  %v2430_v25 = vpack.c.bf16 %v121_v22, %v117_v21  ;;  %v125_v27 = vld [vmem:[#allocation5 + $0x100] sm:$0xff] }
  0x63   :  { %1884 = vmatpush1.bf16.msra.mxu1 %v2418_v13  ;;  %v130_v24 = vld [vmem:[#allocation5 + $0x128] sm:$0xff]  ;;  %v129_v28 = vld [vmem:[#allocation5 + $0x120] sm:$0xff] }
  0x64   :  { %1886 = vmatprep.subr.bf16.mxu1 %v2421_v14  ;;  %v2433_v26 = vpack.c.bf16 %v130_v24, %v126_v23  ;;  %v134_v29 = vld [vmem:[#allocation5 + $0x148] sm:$0xff]  ;;  %v2436_v31 = vpack.c.bf16 %v129_v28, %v125_v27  ;;  %v133_v33 = vld [vmem:[#allocation5 + $0x140] sm:$0xff] }
  0x65   :  { %v138_v30 = vld [vmem:[#allocation5 + $0x168] sm:$0xff]  ;;  %v137_v34 = vld [vmem:[#allocation5 + $0x160] sm:$0xff] }
  0x66   :  { %v2439_v32 = vpack.c.bf16 %v138_v30, %v134_v29  ;;  %v142_v35 = vld [vmem:[#allocation5 + $0x188] sm:$0xff]  ;;  %v2442_v37 = vpack.c.bf16 %v137_v34, %v133_v33  ;;  %v141_v39 = vld [vmem:[#allocation5 + $0x180] sm:$0xff] }
  0x67   :  { %1888 = vmatpush1.bf16.msra.mxu1 %v2424_v19  ;;  %v146_v36 = vld [vmem:[#allocation5 + $0x1a8] sm:$0xff]  ;;  %v145_v40 = vld [vmem:[#allocation5 + $0x1a0] sm:$0xff] }
  0x68   :  { %1890 = vmatprep.subr.bf16.mxu1 %v2427_v20  ;;  %2753 = vst [vmem:[#allocation16_spill] sm:$0xff] %v2439_v32  ;;  %2754 = vst [vmem:[#allocation17_spill] sm:$0xff] %v2442_v37  ;;  %v2445_v38 = vpack.c.bf16 %v146_v36, %v142_v35  ;;  %v2447_v41 = vld [vmem:[#allocation2 + $0x8] sm:$0xff]  ;;  %v2451_v44 = vpack.c.bf16 %v145_v40, %v141_v39  ;;  %v149_v46 = vld [vmem:[#allocation5 + $0x1c0] sm:$0xff] }
  0x69   :  { %v150_v42 = vld [vmem:[#allocation5 + $0x1c8] sm:$0xff]  ;;  %285 = vmatprep.mubr.f32.mxu1 %v2447_v41  ;;  %v153_v47 = vld [vmem:[#allocation5 + $0x1e0] sm:$0xff] }
  0x6a   :  { %2755 = vst [vmem:[#allocation18_spill] sm:$0xff] %v2445_v38  ;;  %v154_v43 = vld [vmem:[#allocation5 + $0x1e8] sm:$0xff]  ;;  %2756 = vst [vmem:[#allocation19_spill] sm:$0xff] %v2451_v44  ;;  %v2457_v50 = vpack.c.bf16 %v153_v47, %v149_v46  ;;  %v157_v52 = vld [vmem:[#allocation5 + $0x200] sm:$0xff] }
  0x6b   :  { %1892 = vmatpush1.bf16.msra.mxu1 %v2430_v25  ;;  %v2454_v45 = vpack.c.bf16 %v154_v43, %v150_v42  ;;  %v158_v48 = vld [vmem:[#allocation5 + $0x208] sm:$0xff]  ;;  %v161_v53 = vld [vmem:[#allocation5 + $0x220] sm:$0xff] }
  0x6c   :  { %1894 = vmatprep.subr.bf16.mxu1 %v2433_v26  ;;  %v162_v49 = vld [vmem:[#allocation5 + $0x228] sm:$0xff]  ;;  %2758 = vst [vmem:[#allocation21_spill] sm:$0xff] %v2457_v50  ;;  %v2463_v56 = vpack.c.bf16 %v161_v53, %v157_v52  ;;  %v165_v58 = vld [vmem:[#allocation5 + $0x240] sm:$0xff] }
  0x6d   :  { %2757 = vst [vmem:[#allocation20_spill] sm:$0xff] %v2454_v45  ;;  %v2460_v51 = vpack.c.bf16 %v162_v49, %v158_v48  ;;  %v166_v54 = vld [vmem:[#allocation5 + $0x248] sm:$0xff]  ;;  %v169_v59 = vld [vmem:[#allocation5 + $0x260] sm:$0xff]  ;;  %v96_v48 = vld [vmem:[#allocation5 + $0x18] sm:$0xff] }
  0x6e   :  { %v170_v55 = vld [vmem:[#allocation5 + $0x268] sm:$0xff]  ;;  %2760 = vst [vmem:[#allocation23_spill] sm:$0xff] %v2463_v56  ;;  %v2469_v62 = vpack.c.bf16 %v169_v59, %v165_v58  ;;  %v173_v0 = vld [vmem:[#allocation5 + $0x280] sm:$0xff]  ;;  %v100_v49 = vld [vmem:[#allocation5 + $0x38] sm:$0xff] }
  0x6f   :  { %1896 = vmatpush1.bf16.msra.mxu1 %v2436_v31  ;;  %2759 = vst [vmem:[#allocation22_spill] sm:$0xff] %v2460_v51  ;;  %v2466_v57 = vpack.c.bf16 %v170_v55, %v166_v54  ;;  %v174_v60 = vld [vmem:[#allocation5 + $0x288] sm:$0xff]  ;;  %v177_v1 = vld [vmem:[#allocation5 + $0x2a0] sm:$0xff]  ;;  %v2497_v53 = vpack.c.bf16 %v100_v49, %v96_v48  ;;  %v95_v54 = vld [vmem:[#allocation5 + $0x10] sm:$0xff] }
  0x70   :  { %1898 = vmatprep.subr.bf16.mxu1 %v2439_v32  ;;  %v178_v61 = vld [vmem:[#allocation5 + $0x2a8] sm:$0xff]  ;;  %2762 = vst [vmem:[#allocation25_spill] sm:$0xff] %v2469_v62  ;;  %v2475_v5 = vpack.c.bf16 %v177_v1, %v173_v0  ;;  %v181_v9 = vld [vmem:[#allocation5 + $0x2c0] sm:$0xff]  ;;  %v99_v55 = vld [vmem:[#allocation5 + $0x30] sm:$0xff] }
  0x71   :  { %2761 = vst [vmem:[#allocation24_spill] sm:$0xff] %v2466_v57  ;;  %v2472_v63 = vpack.c.bf16 %v178_v61, %v174_v60  ;;  %v182_v2 = vld [vmem:[#allocation5 + $0x2c8] sm:$0xff]  ;;  %v185_v10 = vld [vmem:[#allocation5 + $0x2e0] sm:$0xff]  ;;  %v104_v58 = vld [vmem:[#allocation5 + $0x58] sm:$0xff]  ;;  %v2501_v61 = vpack.c.bf16 %v99_v55, %v95_v54 }
  0x72   :  { %v186_v4 = vld [vmem:[#allocation5 + $0x2e8] sm:$0xff]  ;;  %2764 = vst [vmem:[#allocation27_spill] sm:$0xff] %v2475_v5  ;;  %v2481_v15 = vpack.c.bf16 %v185_v10, %v181_v9  ;;  %v189_v17 = vld [vmem:[#allocation5 + $0x300] sm:$0xff]  ;;  %v108_v59 = vld [vmem:[#allocation5 + $0x78] sm:$0xff] }
  0x73   :  { %1900 = vmatpush1.bf16.msra.mxu1 %v2442_v37  ;;  %2763 = vst [vmem:[#allocation26_spill] sm:$0xff] %v2472_v63  ;;  %v2478_v6 = vpack.c.bf16 %v186_v4, %v182_v2  ;;  %v190_v11 = vld [vmem:[#allocation5 + $0x308] sm:$0xff]  ;;  %v193_v18 = vld [vmem:[#allocation5 + $0x320] sm:$0xff]  ;;  %v2504_v0 = vpack.c.bf16 %v108_v59, %v104_v58  ;;  %v103_v1 = vld [vmem:[#allocation5 + $0x50] sm:$0xff] }
  0x74   :  { %1902 = vmatprep.subr.bf16.mxu1 %v2445_v38  ;;  %v194_v12 = vld [vmem:[#allocation5 + $0x328] sm:$0xff]  ;;  %2766 = vst [vmem:[#allocation29_spill] sm:$0xff] %v2481_v15  ;;  %v2487_v23 = vpack.c.bf16 %v193_v18, %v189_v17  ;;  %v197_v27 = vld [vmem:[#allocation5 + $0x340] sm:$0xff]  ;;  %v107_v2 = vld [vmem:[#allocation5 + $0x70] sm:$0xff] }
  0x75   :  { %2765 = vst [vmem:[#allocation28_spill] sm:$0xff] %v2478_v6  ;;  %v2484_v16 = vpack.c.bf16 %v194_v12, %v190_v11  ;;  %v198_v21 = vld [vmem:[#allocation5 + $0x348] sm:$0xff]  ;;  %v201_v28 = vld [vmem:[#allocation5 + $0x360] sm:$0xff]  ;;  %v2506_v4 = vld [vmem:[#allocation2 + $0x18] sm:$0xff]  ;;  %v2510_v11 = vpack.c.bf16 %v107_v2, %v103_v1 }
  0x76   :  { %v202_v22 = vld [vmem:[#allocation5 + $0x368] sm:$0xff]  ;;  %2768 = vst [vmem:[#allocation31_spill] sm:$0xff] %v2487_v23  ;;  %v2493_v33 = vpack.c.bf16 %v201_v28, %v197_v27  ;;  %v205_v35 = vld [vmem:[#allocation5 + $0x380] sm:$0xff]  ;;  %v112_v9 = vld [vmem:[#allocation5 + $0x98] sm:$0xff] }
  0x77   :  { %1904 = vmatpush1.bf16.msra.mxu1 %v2451_v44  ;;  %2767 = vst [vmem:[#allocation30_spill] sm:$0xff] %v2484_v16  ;;  %v2490_v24 = vpack.c.bf16 %v202_v22, %v198_v21  ;;  %v206_v29 = vld [vmem:[#allocation5 + $0x388] sm:$0xff]  ;;  %v209_v36 = vld [vmem:[#allocation5 + $0x3a0] sm:$0xff]  ;;  %v116_v10 = vld [vmem:[#allocation5 + $0xb8] sm:$0xff] }
  0x78   :  { %1906 = vmatprep.subr.bf16.mxu1 %v2454_v45  ;;  %v210_v30 = vld [vmem:[#allocation5 + $0x3a8] sm:$0xff]  ;;  %2770 = vst [vmem:[#allocation33_spill] sm:$0xff] %v2493_v33  ;;  %v1935_v42 = vpack.c.bf16 %v209_v36, %v205_v35  ;;  %v213_v46 = vld [vmem:[#allocation5 + $0x3c0] sm:$0xff]  ;;  %v2513_v12 = vld [vmem:[#allocation2 + $0x10] sm:$0xff]  ;;  %v2516_v17 = vpack.c.bf16 %v116_v10, %v112_v9 }
  0x79   :  { %2769 = vst [vmem:[#allocation32_spill] sm:$0xff] %v2490_v24  ;;  %v1933_v34 = vpack.c.bf16 %v210_v30, %v206_v29  ;;  %v214_v39 = vld [vmem:[#allocation5 + $0x3c8] sm:$0xff]  ;;  %v217_v47 = vld [vmem:[#allocation5 + $0x3e0] sm:$0xff]  ;;  %v111_v18 = vld [vmem:[#allocation5 + $0x90] sm:$0xff] }
  0x7a   :  { %v218_v40 = vld [vmem:[#allocation5 + $0x3e8] sm:$0xff]  ;;  %v1939_v52 = vpack.c.bf16 %v217_v47, %v213_v46  ;;  %v2499_v60 = vld [vmem:[#allocation2] sm:$0xff]  ;;  %v115_v21 = vld [vmem:[#allocation5 + $0xb0] sm:$0xff] }
  0x7b   :  { %1908 = vmatpush1.bf16.msra.mxu1 %v2457_v50  ;;  %v1937_v43 = vpack.c.bf16 %v218_v40, %v214_v39  ;;  %v120_v22 = vld [vmem:[#allocation5 + $0xd8] sm:$0xff]  ;;  %v2520_v28 = vpack.c.bf16 %v115_v21, %v111_v18  ;;  %v119_v30 = vld [vmem:[#allocation5 + $0xd0] sm:$0xff]  ;;  %v962_v37 = vld [vmem:[#allocation10 + $0x10] sm:$0xff] }
  0x7c   :  { %1910 = vmatprep.subr.bf16.mxu1 %v2460_v51  ;;  %v124_v27 = vld [vmem:[#allocation5 + $0xf8] sm:$0xff]  ;;  %v135_v49 = vld [vmem:[#allocation5 + $0x150] sm:$0xff] }
  0x7d   :  { %v2524_v29 = vpack.c.bf16 %v124_v27, %v120_v22  ;;  %v128_v35 = vld [vmem:[#allocation5 + $0x118] sm:$0xff]  ;;  %v143_v1 = vld [vmem:[#allocation5 + $0x190] sm:$0xff] }
  0x7e   :  { %v132_v36 = vld [vmem:[#allocation5 + $0x138] sm:$0xff]  ;;  %v147_v2 = vld [vmem:[#allocation5 + $0x1b0] sm:$0xff] }
  0x7f   :  { %1912 = vmatpush1.bf16.msra.mxu1 %v2463_v56  ;;  %v2530_v40 = vpack.c.bf16 %v132_v36, %v128_v35  ;;  %v136_v46 = vld [vmem:[#allocation5 + $0x158] sm:$0xff]  ;;  %v2545_v18 = vpack.c.bf16 %v147_v2, %v143_v1  ;;  %v151_v22 = vld [vmem:[#allocation5 + $0x1d0] sm:$0xff] }
  0x80   :  { %1914 = vmatprep.subr.bf16.mxu1 %v2466_v57  ;;  %v144_v54 = vld [vmem:[#allocation5 + $0x198] sm:$0xff]  ;;  %v155_v27 = vld [vmem:[#allocation5 + $0x1f0] sm:$0xff] }
  0x81   :  { %v148_v55 = vld [vmem:[#allocation5 + $0x1b8] sm:$0xff]  ;;  %v2551_v35 = vpack.c.bf16 %v155_v27, %v151_v22  ;;  %v175_v22 = vld [vmem:[#allocation5 + $0x290] sm:$0xff] }
  0x82   :  { %v2542_v59 = vpack.c.bf16 %v148_v55, %v144_v54  ;;  %v152_v9 = vld [vmem:[#allocation5 + $0x1d8] sm:$0xff]  ;;  %v167_v54 = vld [vmem:[#allocation5 + $0x250] sm:$0xff] }
  0x83   :  { %1916 = vmatpush1.bf16.msra.mxu1 %v2469_v62  ;;  %v156_v10 = vld [vmem:[#allocation5 + $0x1f8] sm:$0xff]  ;;  %v171_v55 = vld [vmem:[#allocation5 + $0x270] sm:$0xff] }
  0x84   :  { %1918 = vmatprep.subr.bf16.mxu1 %v2472_v63  ;;  %v2548_v21 = vpack.c.bf16 %v156_v10, %v152_v9  ;;  %v176_v1 = vld [vmem:[#allocation5 + $0x298] sm:$0xff]  ;;  %v2563_v9 = vpack.c.bf16 %v171_v55, %v167_v54  ;;  %v179_v27 = vld [vmem:[#allocation5 + $0x2b0] sm:$0xff] }
  0x85   :  { %v180_v2 = vld [vmem:[#allocation5 + $0x2b8] sm:$0xff]  ;;  %v219_v63 = vld [vmem:[#allocation5 + $0x3f0] sm:$0xff] }
  0x86   :  { %v2566_v10 = vpack.c.bf16 %v180_v2, %v176_v1  ;;  %v192_v54 = vld [vmem:[#allocation5 + $0x318] sm:$0xff] }
  0x87   :  { %1920 = vmatpush1.bf16.msra.mxu1 %v2475_v5  ;;  %v196_v55 = vld [vmem:[#allocation5 + $0x338] sm:$0xff]  ;;  %v215_v5 = vld [vmem:[#allocation5 + $0x3d0] sm:$0xff] }
  0x88   :  { %1922 = vmatprep.subr.bf16.mxu1 %v2478_v6  ;;  %v2578_v2 = vpack.c.bf16 %v196_v55, %v192_v54  ;;  %v211_v6 = vld [vmem:[#allocation5 + $0x3b0] sm:$0xff] }
  0x8b   :  { %1924 = vmatpush1.bf16.msra.mxu1 %v2481_v15  ;;  %v207_v15 = vld [vmem:[#allocation5 + $0x390] sm:$0xff] }
  0x8c   :  { %1926 = vmatprep.subr.bf16.mxu1 %v2484_v16  ;;  %v203_v16 = vld [vmem:[#allocation5 + $0x370] sm:$0xff] }
  0x8f   :  { %1928 = vmatpush1.bf16.msra.mxu1 %v2487_v23  ;;  %v199_v23 = vld [vmem:[#allocation5 + $0x350] sm:$0xff] }
  0x90   :  { %1930 = vmatprep.subr.bf16.mxu1 %v2490_v24  ;;  %v195_v24 = vld [vmem:[#allocation5 + $0x330] sm:$0xff]  ;;  %v2587_v54 = vpack.c.bf16 %v203_v16, %v199_v23  ;;  %v2599_v16 = vpack.c.bf16 %v219_v63, %v215_v5 }
  0x93   :  { %1932 = vmatpush1.bf16.msra.mxu1 %v2493_v33  ;;  %v191_v33 = vld [vmem:[#allocation5 + $0x310] sm:$0xff] }
  0x94   :  { %1934 = vmatprep.subr.bf16.mxu1 %v1933_v34  ;;  %v123_v34 = vld [vmem:[#allocation5 + $0xf0] sm:$0xff] }
  0x95   :  { %v2527_v39 = vpack.c.bf16 %v123_v34, %v119_v30  ;;  %v160_v30 = vld [vmem:[#allocation5 + $0x218] sm:$0xff] }
  0x96   :  { %v164_v34 = vld [vmem:[#allocation5 + $0x238] sm:$0xff] }
  0x97   :  { %1936 = vmatpush1.bf16.msra.mxu1 %v1935_v42  ;;  %v127_v42 = vld [vmem:[#allocation5 + $0x110] sm:$0xff]  ;;  %v2554_v36 = vpack.c.bf16 %v164_v34, %v160_v30  ;;  %v184_v30 = vld [vmem:[#allocation5 + $0x2d8] sm:$0xff] }
  0x98   :  { %1938 = vmatprep.subr.bf16.mxu1 %v1937_v43  ;;  %v131_v43 = vld [vmem:[#allocation5 + $0x130] sm:$0xff]  ;;  %v188_v34 = vld [vmem:[#allocation5 + $0x2f8] sm:$0xff] }
  0x99   :  { %v2533_v47 = vpack.c.bf16 %v131_v43, %v127_v42  ;;  %v159_v42 = vld [vmem:[#allocation5 + $0x210] sm:$0xff] }
  0x9a   :  { %v163_v43 = vld [vmem:[#allocation5 + $0x230] sm:$0xff] }
  0x9b   :  { %1940 = vmatpush1.bf16.msra.mxu1 %v1939_v52  ;;  %v139_v52 = vld [vmem:[#allocation5 + $0x170] sm:$0xff] }
  0x9c   :  { %1942 = vmatprep.subr.bf16.mxu1 %v2497_v53  ;;  %v2539_v58 = vpack.c.bf16 %v139_v52, %v135_v49  ;;  %v2557_v49 = vpack.c.bf16 %v163_v43, %v159_v42  ;;  %v2569_v42 = vpack.c.bf16 %v179_v27, %v175_v22  ;;  %v2572_v43 = vpack.c.bf16 %v188_v34, %v184_v30  ;;  %v200_v22 = vld [vmem:[#allocation5 + $0x358] sm:$0xff] }
  0x9d   :  { %v204_v27 = vld [vmem:[#allocation5 + $0x378] sm:$0xff]  ;;  %v2581_v30 = vpack.c.bf16 %v195_v24, %v191_v33 }
  0x9e   :  { %286 = vmatmul.mubr.f32.vlgmr.msra.gmra.mrb[0].mxu1 %v2499_v60  ;;  %v2584_v34 = vpack.c.bf16 %v204_v27, %v200_v22  ;;  %v216_v24 = vld [vmem:[#allocation5 + $0x3d8] sm:$0xff]  ;;  %v2593_v22 = vpack.c.bf16 %v211_v6, %v207_v15  ;;  %v2747_v6 = vmov 0.0  }
  0x9f   :  { %1944 = vmatpush1.bf16.msra.mxu1 %v2501_v61  ;;  %291 = vmatprep.mubr.f32.mxu1 %v2506_v4  ;;  %v220_v33 = vld [vmem:[#allocation5 + $0x3f8] sm:$0xff] }
  0xa0   :  { %1946 = vmatprep.subr.bf16.mxu1 %v2504_v0  ;;  %v2596_v27 = vpack.c.bf16 %v220_v33, %v216_v24  ;;  %445 = vmatprep.mubr.f32.mxu0 %v2747_v6 }
  0xa2   :  { %292 = vmatmul.mubr.f32.gmra.mrb[2].mxu1 %v2513_v12 }
  0xa3   :  { %1948 = vmatpush1.bf16.msra.mxu1 %v2510_v11  ;;  %362 = vmatprep.mubr.f32.mxu1 %v2447_v41  ;;  %v140_v41 = vld [vmem:[#allocation5 + $0x178] sm:$0xff] }
  0xa4   :  { %1950 = vmatprep.subr.bf16.mxu1 %v2516_v17  ;;  %v2536_v48 = vpack.c.bf16 %v140_v41, %v136_v46  ;;  %v168_v46 = vld [vmem:[#allocation5 + $0x258] sm:$0xff] }
  0xa5   :  { %v172_v41 = vld [vmem:[#allocation5 + $0x278] sm:$0xff] }
  0xa6   :  { %v2560_v52 = vpack.c.bf16 %v172_v41, %v168_v46  ;;  %v183_v46 = vld [vmem:[#allocation5 + $0x2d0] sm:$0xff] }
  0xa7   :  { %1952 = vmatpush1.bf16.msra.mxu1 %v2520_v28  ;;  %v187_v41 = vld [vmem:[#allocation5 + $0x2f0] sm:$0xff] }
  0xa8   :  { %1954 = vmatprep.subr.bf16.mxu1 %v2524_v29  ;;  %v2575_v1 = vpack.c.bf16 %v187_v41, %v183_v46  ;;  %v208_v46 = vld [vmem:[#allocation5 + $0x398] sm:$0xff] }
  0xa9   :  { %v212_v41 = vld [vmem:[#allocation5 + $0x3b8] sm:$0xff] }
  0xaa   :  { %v2590_v55 = vpack.c.bf16 %v212_v41, %v208_v46  ;;  %v375_v46 = vld [vmem:[#allocation7] sm:$0xff] }
  0xab   :  { %1956 = vmatpush1.bf16.msra.mxu1 %v2527_v39 }
  0xac   :  { %1958 = vmatprep.subr.bf16.mxu1 %v2530_v40 }
  0xaf   :  { %1960 = vmatpush1.bf16.msra.mxu1 %v2533_v47 }
  0xb0   :  { %1962 = vmatprep.subr.bf16.mxu1 %v2536_v48 }
  0xb3   :  { %1964 = vmatpush1.bf16.msra.mxu1 %v2539_v58 }
  0xb4   :  { %1966 = vmatprep.subr.bf16.mxu1 %v2542_v59 }
  0xb7   :  { %1968 = vmatpush1.bf16.msra.mxu1 %v2545_v18 }
  0xb8   :  { %1970 = vmatprep.subr.bf16.mxu1 %v2548_v21 }
  0xbb   :  { %1972 = vmatpush1.bf16.msra.mxu1 %v2551_v35 }
  0xbc   :  { %1974 = vmatprep.subr.bf16.mxu1 %v2554_v36 }
  0xbf   :  { %1976 = vmatpush1.bf16.msra.mxu1 %v2557_v49 }
  0xc0   :  { %1978 = vmatprep.subr.bf16.mxu1 %v2560_v52 }
  0xc3   :  { %1980 = vmatpush1.bf16.msra.mxu1 %v2563_v9 }
  0xc4   :  { %1982 = vmatprep.subr.bf16.mxu1 %v2566_v10 }
  0xc7   :  { %1984 = vmatpush1.bf16.msra.mxu1 %v2569_v42 }
  0xc8   :  { %1986 = vmatprep.subr.bf16.mxu1 %v2572_v43 }
  0xcb   :  { %1988 = vmatpush1.bf16.msra.mxu1 %v2575_v1 }
  0xcc   :  { %1990 = vmatprep.subr.bf16.mxu1 %v2578_v2 }
  0xcf   :  { %1992 = vmatpush1.bf16.msra.mxu1 %v2581_v30 }
  0xd0   :  { %1994 = vmatprep.subr.bf16.mxu1 %v2584_v34 }
  0xd3   :  { %1996 = vmatpush1.bf16.msra.mxu1 %v2587_v54 }
  0xd4   :  { %1998 = vmatprep.subr.bf16.mxu1 %v2590_v55 }
  0xd7   :  { %2000 = vmatpush1.bf16.msra.mxu1 %v2593_v22 }
  0xd8   :  { %2002 = vmatprep.subr.bf16.mxu1 %v2596_v27 }
  0xdb   :  { %2004 = vmatpush1.bf16.msra.mxu1 %v2599_v16 }
  0xde   :  { %363 = vmatmul.mubr.f32.vlgmr.msra.gmra.mrb[4].mxu1 %v2499_v60 }
  0xdf   :  { %368 = vmatprep.mubr.f32.mxu1 %v2506_v4 }
  0xe2   :  { %369 = vmatmul.mubr.f32.gmra.mrb[6].mxu1 %v2513_v12  ;;  %v376_v12 = vld [vmem:[%s2728_s3] sm:$0xff] }
  0xe3   :  { %516 = vmatprep.mubr.f32.mxu1 %v2747_v6 }
 0x171   :  { %v287_v15 = vpop.f32.mrb[0].mxu1 }
 0x172   :  { %v289_v23 = vpop.f32.mrb[1].mxu1 }
 0x173   :  { %381 = vmatprep.subr.mxu0 %v289_v23 }
 0x174   :  { %382 = vmatpush1.msra.mxu0 %v287_v15 }
 0x175   :  { %v293_v63 = vpop.f32.mrb[2].mxu1  ;;  %1861 = vmatmul.mubr.msk.f32.vlgmr.msra.gmra.mrb[0].mxu0 %vm377_vm0, %v375_v46 }
 0x176   :  { %v295_v5 = vpop.f32.mrb[3].mxu1  ;;  %587 = vmatprep.mubr.f32.mxu0 %v2747_v6 }
 0x177   :  { %523 = vmatprep.subr.mxu0 %v295_v5 }
 0x178   :  { %524 = vmatpush1.msra.mxu0 %v293_v63 }
 0x179   :  { %1863 = vmatmul.mubr.msk.f32.vlgmr.msra.gmra.mrb[2].mxu0 %vm377_vm0, %v375_v46 }
 0x17a   :  { %803 = vmatprep.mubr.f32.mxu0 %v2747_v6 }
 0x1b1   :  { %v364_v60 = vpop.f32.mrb[4].mxu1 }
 0x1b2   :  { %v366_v4 = vpop.f32.mrb[5].mxu1 }
 0x1b3   :  { %452 = vmatprep.subr.mxu1 %v366_v4  ;;  %739 = vmatprep.subr.mxu0 %v366_v4 }
 0x1b4   :  { %453 = vmatpush1.msra.mxu1 %v364_v60  ;;  %740 = vmatpush1.msra.mxu0 %v364_v60 }
 0x1b5   :  { %v370_v41 = vpop.f32.mrb[6].mxu1  ;;  %1862 = vmatmul.mubr.msk.f32.vlgmr.msra.gmra.mrb[8].mxu1 %vm377_vm0, %v375_v46  ;;  %1866 = vmatmul.mubr.msk.f32.vlgmr.msra.gmra.mrb[4].mxu0 %vm377_vm0, %v376_v12 }
 0x1b6   :  { %v372_v24 = vpop.f32.mrb[7].mxu1  ;;  %658 = vmatprep.mubr.f32.mxu1 %v2747_v6  ;;  %945 = vmatprep.mubr.f32.mxu0 %v2747_v6 }
 0x1b7   :  { %594 = vmatprep.subr.mxu1 %v372_v24  ;;  %881 = vmatprep.subr.mxu0 %v372_v24  ;;  %v961_v24 = vld [vmem:[#allocation10 + $0x8] sm:$0xff] }
 0x1b8   :  { %595 = vmatpush1.msra.mxu1 %v370_v41  ;;  %882 = vmatpush1.msra.mxu0 %v370_v41 }
 0x1b9   :  { %1864 = vmatmul.mubr.msk.f32.vlgmr.msra.gmra.mrb[10].mxu1 %vm377_vm0, %v375_v46  ;;  %668 = vmatprep.subr.mxu1 %v289_v23 }
 0x1ba   :  { %1868 = vmatmul.mubr.msk.f32.vlgmr.msra.gmra.mrb[6].mxu0 %vm377_vm0, %v376_v12  ;;  %669 = vmatpush1.msra.mxu1 %v287_v15  ;;  %v960_v15 = vld [vmem:[#allocation10] sm:$0xff] }
 0x1bb   :  { %810 = vmatprep.subr.mxu1 %v295_v5  ;;  %732 = vmatprep.mubr.f32.mxu1 %v2747_v6 }
 0x1bc   :  { %1041 = vmatprep.mubr.f32.mxu0 %v2747_v6 }
 0x1bd   :  { %1865 = vmatmul.mubr.msk.f32.vlgmr.msra.gmra.mrb[8].mxu1 %vm377_vm0, %v376_v12 }
 0x1be   :  { %811 = vmatpush1.msra.mxu1 %v293_v63  ;;  %874 = vmatprep.mubr.f32.mxu1 %v2747_v6  ;;  %v972_v63 = vld [vmem:[#allocation8] sm:$0xff] }
 0x1c1   :  { %1867 = vmatmul.mubr.msk.f32.vlgmr.msra.gmra.mrb[10].mxu1 %vm377_vm0, %v376_v12 }
 0x1c2   :  { %1112 = vmatprep.mubr.f32.mxu1 %v2747_v6  ;;  %v963_v6 = vld [vmem:[#allocation10 + $0x18] sm:$0xff] }
 0x248   :  { %v447_v33 = vpop.f32.mrb[0].mxu0 }
 0x249   :  { %v449_v46 = vpop.f32.mrb[1].mxu0 }
 0x24c   :  { %v589_v23 = vpop.f32.mrb[2].mxu0 }
 0x24d   :  { %v591_v60 = vpop.f32.mrb[3].mxu0 }
 0x288   :  { %v805_v4 = vpop.f32.mrb[4].mxu0 }
 0x289   :  { %v952_v5 = vsub.f32 %v447_v33, %v805_v4  ;;  %v807_v41 = vpop.f32.mrb[5].mxu0  ;;  %v2771_v4 = vmov 0.0  }
 0x28a   :  { %v953_v62 = vsub.f32 %v449_v46, %v807_v41 }
 0x28b   :  { %v964_v57 = vmul.f32 %v960_v15, %v952_v5 }
 0x28c   :  { %v965_v56 = vmul.f32 %v961_v24, %v953_v62 }
 0x28d   :  { %v947_v51 = vpop.f32.mrb[6].mxu0 }
 0x28e   :  { %v954_v50 = vsub.f32 %v589_v23, %v947_v51  ;;  %v949_v45 = vpop.f32.mrb[7].mxu0  ;;  %977 = vmatprep.subr.mxu0 %v965_v56 }
 0x28f   :  { %v955_v12 = vsub.f32 %v591_v60, %v949_v45  ;;  %978 = vmatpush1.msra.mxu0 %v964_v57 }
 0x290   :  { %v968_v44 = vmul.f32 %v960_v15, %v954_v50  ;;  %v734_v38 = vpop.f32.mrb[8].mxu1  ;;  %1869 = vmatmul.mubr.msk.f32.vlgmr.msra.gmra.mrb[8].mxu0 %vm377_vm0, %v972_v63 }
 0x291   :  { %v969_v32 = vmul.f32 %v961_v24, %v955_v12  ;;  %v736_v33 = vpop.f32.mrb[9].mxu1  ;;  %1183 = vmatprep.mubr.f32.mxu0 %v2771_v4  ;;  %v966_v5 = vmul.f32 %v962_v37, %v734_v38  ;;  %v973_v38 = vld [vmem:[%s2730_s5] sm:$0xff]  ;;  %s2306_s5 = smov [#allocation11]  }
 0x292   :  { %v967_v46 = vmul.f32 %v963_v6, %v736_v33  ;;  %s1847_s17 = sshll.u32 %s2306_s5, 4  ;;  %s1848_s17 = int_to_ptr.vmem [resolvable:$true] %s1847_s17 }
 0x293   :  { %1119 = vmatprep.subr.mxu0 %v969_v32  ;;  %s2266_s19 = scalar_lea.vmem %s1848_s17, 512  ;;  %p2271_p13 = scmp.lt.s32.totalorder %s1848_s17, %s1848_s17 }
 0x294   :  { %1120 = vmatpush1.msra.mxu0 %v968_v44  ;;  %v876_v62 = vpop.f32.mrb[10].mxu1  ;;  %1048 = vmatprep.subr.mxu1 %v967_v46  ;;  %p2267_p12 = scmp.ne.s32.totalorder %s1848_s17, %s2266_s19  ;;  %p2272_p0 = scmp.lt.s32.totalorder %s2266_s19, %s2266_s19 }
 0x295   :  { %1335 = vmatprep.subr.mxu0 %v967_v46  ;;  %v878_v51 = vpop.f32.mrb[11].mxu1  ;;  %1049 = vmatpush1.msra.mxu1 %v966_v5  ;;  %v970_v50 = vmul.f32 %v962_v37, %v876_v62 }
 0x296   :  { %v971_v45 = vmul.f32 %v963_v6, %v878_v51  ;;  %1871 = vmatmul.mubr.msk.f32.vlgmr.msra.gmra.mrb[10].mxu0 %vm377_vm0, %v972_v63  ;;  %1870 = vmatmul.mubr.msk.f32.vlgmr.msra.gmra.mrb[12].mxu1 %vm377_vm0, %v972_v63  ;;  %p2273_p1 = por %p2272_p0, %p2271_p13 }
 0x297   :  { %1336 = vmatpush1.msra.mxu0 %v966_v5  ;;  %1399 = vmatprep.mubr.f32.mxu0 %v2771_v4 }
 0x298   :  { %1190 = vmatprep.subr.mxu1 %v971_v45  ;;  %1477 = vmatprep.subr.mxu0 %v971_v45  ;;  %p2274_p2 = pnand %p2273_p1, %p2267_p12 }
 0x299   :  { %1191 = vmatpush1.msra.mxu1 %v970_v50  ;;  %1254 = vmatprep.mubr.f32.mxu1 %v2771_v4 }
 0x29a   :  { %1874 = vmatmul.mubr.msk.f32.vlgmr.msra.gmra.mrb[12].mxu0 %vm377_vm0, %v973_v38  ;;  %1872 = vmatmul.mubr.msk.f32.vlgmr.msra.gmra.mrb[14].mxu1 %vm377_vm0, %v972_v63 }
 0x29b   :  { %1478 = vmatpush1.msra.mxu0 %v970_v50  ;;  %1264 = vmatprep.subr.mxu1 %v965_v56 }
 0x29c   :  { %1265 = vmatpush1.msra.mxu1 %v964_v57  ;;  %1328 = vmatprep.mubr.f32.mxu1 %v2771_v4 }
 0x29d   :  { %1406 = vmatprep.subr.mxu1 %v969_v32  ;;  %1541 = vmatprep.mubr.f32.mxu0 %v2771_v4 }
 0x29e   :  { %1873 = vmatmul.mubr.msk.f32.vlgmr.msra.gmra.mrb[12].mxu1 %vm377_vm0, %v973_v38  ;;  %1876 = vmatmul.mubr.msk.f32.vlgmr.msra.gmra.mrb[14].mxu0 %vm377_vm0, %v973_v38 }
 0x29f   :  { %1407 = vmatpush1.msra.mxu1 %v968_v44  ;;  %1470 = vmatprep.mubr.f32.mxu1 %v2771_v4 }
 0x2a0   :  { %2006 = vmatprep.subr.bf16.mxu0 %v2497_v53 }
 0x2a1   :  { %2008 = vmatpush1.bf16.msra.mxu0 %v2501_v61 }
 0x2a2   :  { %1875 = vmatmul.mubr.msk.f32.vlgmr.msra.gmra.mrb[14].mxu1 %vm377_vm0, %v973_v38  ;;  %2010 = vmatprep.subr.bf16.mxu0 %v2504_v0 }
 0x2a5   :  { %2012 = vmatpush1.bf16.msra.mxu0 %v2510_v11 }
 0x2a6   :  { %2014 = vmatprep.subr.bf16.mxu0 %v2516_v17 }
 0x2a9   :  { %2016 = vmatpush1.bf16.msra.mxu0 %v2520_v28 }
 0x2aa   :  { %2018 = vmatprep.subr.bf16.mxu0 %v2524_v29 }
 0x2ad   :  { %2020 = vmatpush1.bf16.msra.mxu0 %v2527_v39 }
 0x2ae   :  { %2022 = vmatprep.subr.bf16.mxu0 %v2530_v40 }
 0x2b1   :  { %2024 = vmatpush1.bf16.msra.mxu0 %v2533_v47 }
 0x2b2   :  { %2026 = vmatprep.subr.bf16.mxu0 %v2536_v48  ;;  %v2774_v48 = vld [vmem:[#allocation18_spill] sm:$0xff] }
 0x2b5   :  { %2028 = vmatpush1.bf16.msra.mxu0 %v2539_v58  ;;  %v2776_v58 = vld [vmem:[#allocation20_spill] sm:$0xff] }
 0x2b6   :  { %2030 = vmatprep.subr.bf16.mxu0 %v2542_v59  ;;  %v2783_v59 = vld [vmem:[#allocation27_spill] sm:$0xff] }
 0x2b9   :  { %2032 = vmatpush1.bf16.msra.mxu0 %v2545_v18  ;;  %v2784_v18 = vld [vmem:[#allocation28_spill] sm:$0xff] }
 0x2ba   :  { %2034 = vmatprep.subr.bf16.mxu0 %v2548_v21  ;;  %v2785_v21 = vld [vmem:[#allocation29_spill] sm:$0xff] }
 0x2bd   :  { %2036 = vmatpush1.bf16.msra.mxu0 %v2551_v35  ;;  %v2786_v35 = vld [vmem:[#allocation30_spill] sm:$0xff] }
 0x2be   :  { %2038 = vmatprep.subr.bf16.mxu0 %v2554_v36  ;;  %v1613_v36 = vld [vmem:[#allocation5 + $0x388] sm:$0xff] }
 0x2c1   :  { %2040 = vmatpush1.bf16.msra.mxu0 %v2557_v49  ;;  %v1615_v49 = vld [vmem:[#allocation5 + $0x3a8] sm:$0xff] }
 0x2c2   :  { %2042 = vmatprep.subr.bf16.mxu0 %v2560_v52  ;;  %v2787_v52 = vld [vmem:[#allocation31_spill] sm:$0xff] }
 0x2c5   :  { %2044 = vmatpush1.bf16.msra.mxu0 %v2563_v9  ;;  %v2788_v9 = vld [vmem:[#allocation32_spill] sm:$0xff] }
 0x2c6   :  { %2046 = vmatprep.subr.bf16.mxu0 %v2566_v10  ;;  %v2125_v10 = vpack.c.bf16 %v1615_v49, %v1613_v36 }
 0x2c9   :  { %2048 = vmatpush1.bf16.msra.mxu0 %v2569_v42  ;;  %v1612_v42 = vld [vmem:[#allocation5 + $0x380] sm:$0xff] }
 0x2ca   :  { %2050 = vmatprep.subr.bf16.mxu0 %v2572_v43  ;;  %v1614_v43 = vld [vmem:[#allocation5 + $0x3a0] sm:$0xff] }
 0x2cd   :  { %2052 = vmatpush1.bf16.msra.mxu0 %v2575_v1  ;;  %v1617_v1 = vld [vmem:[#allocation5 + $0x3c8] sm:$0xff] }
 0x2ce   :  { %2054 = vmatprep.subr.bf16.mxu0 %v2578_v2  ;;  %v1619_v2 = vld [vmem:[#allocation5 + $0x3e8] sm:$0xff] }
 0x2d1   :  { %2056 = vmatpush1.bf16.msra.mxu0 %v2581_v30  ;;  %v2789_v30 = vld [vmem:[#allocation33_spill] sm:$0xff] }
 0x2d2   :  { %2058 = vmatprep.subr.bf16.mxu0 %v2584_v34  ;;  %v2127_v34 = vpack.c.bf16 %v1614_v43, %v1612_v42 }
 0x2d5   :  { %2060 = vmatpush1.bf16.msra.mxu0 %v2587_v54  ;;  %v2129_v54 = vpack.c.bf16 %v1619_v2, %v1617_v1 }
 0x2d6   :  { %2062 = vmatprep.subr.bf16.mxu0 %v2590_v55  ;;  %v1616_v55 = vld [vmem:[#allocation5 + $0x3c0] sm:$0xff] }
 0x2d9   :  { %2064 = vmatpush1.bf16.msra.mxu0 %v2593_v22  ;;  %v1618_v22 = vld [vmem:[#allocation5 + $0x3e0] sm:$0xff] }
 0x2da   :  { %2066 = vmatprep.subr.bf16.mxu0 %v2596_v27  ;;  %v2131_v27 = vpack.c.bf16 %v1618_v22, %v1616_v55 }
 0x2dd   :  { %2068 = vmatpush1.bf16.msra.mxu0 %v2599_v16 }
 0x2de   :  { %2070 = vmatprep.subr.bf16.mxu0 %v2410_v3 }
 0x363   :  { %v2677_v32 = vpop.f32.mrb[8].mxu0 }
 0x364   :  { %v1045_v37 = vpop.f32.mrb[9].mxu0 }
 0x369   :  { %v2679_v44 = vpop.f32.mrb[10].mxu0 }
 0x36a   :  { %v1187_v56 = vpop.f32.mrb[11].mxu0 }
 0x36d   :  { %v1401_v57 = vpop.f32.mrb[12].mxu0 }
 0x36e   :  { %v1548_v53 = vsub.f32 %v2677_v32, %v1401_v57  ;;  %v1403_v61 = vpop.f32.mrb[13].mxu0 }
 0x36f   :  { %v1549_v0 = vsub.f32 %v1045_v37, %v1403_v61 }
 0x371   :  { %v1330_v11 = vpop.f32.mrb[12].mxu1  ;;  %v1543_v17 = vpop.f32.mrb[14].mxu0 }
 0x372   :  { %v1332_v28 = vpop.f32.mrb[13].mxu1  ;;  %v1550_v29 = vsub.f32 %v2679_v44, %v1543_v17  ;;  %v1545_v39 = vpop.f32.mrb[15].mxu0 }
 0x373   :  { %1748 = vmatprep.mubr.f32.mxu0 %v1332_v28  ;;  %v1551_v40 = vsub.f32 %v1187_v56, %v1545_v39 }
 0x374   :  { %1749 = vmatmul.mubr.f32.vlgmr.msra.gmra.mrb[16].mxu0 %v1330_v11 }
 0x375   :  { %2072 = vmatpush1.bf16.msra.mxu0 %v2412_v7  ;;  %v1472_v3 = vpop.f32.mrb[14].mxu1  ;;  %v2772_v7 = vld [vmem:[#allocation16_spill] sm:$0xff] }
 0x376   :  { %v1474_v47 = vpop.f32.mrb[15].mxu1  ;;  %2074 = vmatprep.subr.bf16.mxu0 %v2414_v8  ;;  %v2773_v8 = vld [vmem:[#allocation17_spill] sm:$0xff] }
 0x377   :  { %1754 = vmatprep.mubr.f32.mxu0 %v1474_v47 }
 0x378   :  { %1755 = vmatmul.mubr.f32.gmra.mrb[18].mxu0 %v1472_v3 }
 0x379   :  { %2076 = vmatpush1.bf16.msra.mxu0 %v2418_v13  ;;  %1825 = vmatprep.mubr.f32.mxu0 %v1549_v0  ;;  %v2775_v13 = vld [vmem:[#allocation19_spill] sm:$0xff] }
 0x37a   :  { %2078 = vmatprep.subr.bf16.mxu0 %v2421_v14  ;;  %v2777_v14 = vld [vmem:[#allocation21_spill] sm:$0xff] }
 0x37d   :  { %2080 = vmatpush1.bf16.msra.mxu0 %v2424_v19  ;;  %v2778_v19 = vld [vmem:[#allocation22_spill] sm:$0xff] }
 0x37e   :  { %2082 = vmatprep.subr.bf16.mxu0 %v2427_v20  ;;  %v2779_v20 = vld [vmem:[#allocation23_spill] sm:$0xff] }
 0x381   :  { %2084 = vmatpush1.bf16.msra.mxu0 %v2430_v25  ;;  %v2780_v25 = vld [vmem:[#allocation24_spill] sm:$0xff] }
 0x382   :  { %2086 = vmatprep.subr.bf16.mxu0 %v2433_v26  ;;  %v2781_v26 = vld [vmem:[#allocation25_spill] sm:$0xff] }
 0x385   :  { %2088 = vmatpush1.bf16.msra.mxu0 %v2436_v31  ;;  %v2782_v31 = vld [vmem:[#allocation26_spill] sm:$0xff] }
 0x386   :  { %2090 = vmatprep.subr.bf16.mxu0 %v2772_v7 }
 0x389   :  { %2092 = vmatpush1.bf16.msra.mxu0 %v2773_v8 }
 0x38a   :  { %2094 = vmatprep.subr.bf16.mxu0 %v2774_v48 }
 0x38d   :  { %2096 = vmatpush1.bf16.msra.mxu0 %v2775_v13 }
 0x38e   :  { %2098 = vmatprep.subr.bf16.mxu0 %v2776_v58 }
 0x391   :  { %2100 = vmatpush1.bf16.msra.mxu0 %v2777_v14 }
 0x392   :  { %2102 = vmatprep.subr.bf16.mxu0 %v2778_v19 }
 0x395   :  { %2104 = vmatpush1.bf16.msra.mxu0 %v2779_v20 }
 0x396   :  { %2106 = vmatprep.subr.bf16.mxu0 %v2780_v25 }
 0x399   :  { %2108 = vmatpush1.bf16.msra.mxu0 %v2781_v26 }
 0x39a   :  { %2110 = vmatprep.subr.bf16.mxu0 %v2782_v31 }
 0x39d   :  { %2112 = vmatpush1.bf16.msra.mxu0 %v2783_v59 }
 0x39e   :  { %2114 = vmatprep.subr.bf16.mxu0 %v2784_v18 }
 0x3a1   :  { %2116 = vmatpush1.bf16.msra.mxu0 %v2785_v21 }
 0x3a2   :  { %2118 = vmatprep.subr.bf16.mxu0 %v2786_v35 }
 0x3a5   :  { %2120 = vmatpush1.bf16.msra.mxu0 %v2787_v52 }
 0x3a6   :  { %2122 = vmatprep.subr.bf16.mxu0 %v2788_v9 }
 0x3a9   :  { %2124 = vmatpush1.bf16.msra.mxu0 %v2789_v30 }
 0x3aa   :  { %2126 = vmatprep.subr.bf16.mxu0 %v2125_v10 }
 0x3ad   :  { %2128 = vmatpush1.bf16.msra.mxu0 %v2127_v34 }
 0x3ae   :  { %2130 = vmatprep.subr.bf16.mxu0 %v2129_v54 }
 0x3b1   :  { %2132 = vmatpush1.bf16.msra.mxu0 %v2131_v27 }
 0x3b4   :  { %1826 = vmatmul.mubr.f32.vlgmr.msra.gmra.mrb[16].mxu0 %v1548_v53 }
 0x3b5   :  { %1831 = vmatprep.mubr.f32.mxu0 %v1551_v40 }
 0x3b8   :  { %1832 = vmatmul.mubr.f32.gmra.mrb[18].mxu0 %v1550_v29 }
 0x487   :  { %v1827_v16 = vpop.f32.mrb[16].mxu0 }
 0x488   :  { %1838 = vst [vmem:[#allocation11] sm:$0xff] %v1827_v16  ;;  %v1829_v6 = vpop.f32.mrb[17].mxu0 }
 0x489   :  { %1839 = vst [vmem:[#allocation11 + $0x8] sm:$0xff] %v1829_v6 }
 0x48b   :  { %v1833_v23 = vpop.f32.mrb[18].mxu0 }
 0x48c   :  { %1840 = vst [vmem:[#allocation11 + $0x10] sm:$0xff] %v1833_v23  ;;  %v1835_v60 = vpop.f32.mrb[19].mxu0 }
 0x48d   :  { %1841 = vst [vmem:[#allocation11 + $0x18] sm:$0xff] %v1835_v60 }
 0x48e   :  { %2277 = shalt.err (!%p2274_p2)
}
 0x48f   :  { %s2278_s22 = scalar_lea.hbm %s2732_s7, 512 }
 0x490   :  { %p2279_p3 = scmp.ne.s32.totalorder %s2732_s7, %s2278_s22  ;;  %p2282_p4 = scmp.lt.u32.totalorder %s2278_s22, %s2732_s7 }
 0x492   :  { %p2284_p5 = pnand %p2282_p4, %p2279_p3 }
 0x494   :  { %2287 = shalt.err (!%p2284_p5)
}
 0x495   :  { %1853 = dma.vmem_to_hbm [thread:$0]  %s1848_s17, 512, %s2732_s7, [#allocation4], %s2301_s4, %s2301_s4, %s2302_s13  }
 0x496   :  { %2294 = dma.done.wait [#allocation4], 512  }
 0x497   :  { %2295 = vsyncadd [#allocation4], 4294966784 }
 0x498   :  { %1857 = vsyncpa [#allocation3], 1 }
 0x499   :  { %1858 = vsyncpa [#allocation6], 1 }
 0x49a   :  { %1859 = vsyncpa [#allocation9], 1 }
 0x49b   :  { %1860 = vsyncpa [#allocation4], 1 }

</bundles_post_ra>
